<compile_context>
chip_gen: v7x
topology: tpu7x:2x2x1
jax: 0.10.0
libtpu: 0.0.40
codegen_flags: <defaults>
</compile_context>

<pallas_src>
import jax
import jax.numpy as jnp
from jax import lax
from jax.experimental import pallas as pl
from jax.experimental.pallas import tpu as pltpu


# Hard-coded 19-class weights from the PyTorch module (use_weight=True).
_CITYSCAPES_WEIGHTS = (
    0.8194, 0.8946, 0.9416, 1.0091, 0.9925, 0.974, 1.0804, 1.0192, 0.8528,
    0.9771, 0.9139, 0.9744, 1.1098, 0.8883, 1.0639, 1.2476, 1.0729, 1.1323,
    1.0365,
)

_TILE_CANDIDATES = (16384, 8192, 4096, 2048, 1024, 512, 256, 128)


def _choose_tile(n):
    """Return (TN, padded_N). Prefer exact divisors; otherwise pad N up."""
    for cand in _TILE_CANDIDATES:
        if n % cand == 0:
            return cand, n
    for cand in _TILE_CANDIDATES:
        if cand <= n:
            padded = -(-n // cand) * cand
            return cand, padded
    return 128, 128  # n < 128: a single padded 128-lane tile


def _make_kernel(weight_vals, ignore_index, use_weight, num_classes):
    """Build the per-(batch, superchunk, tile) kernel body.

    x_ref   : (1, C, TN)    logits tile (native dtype; class on sublanes, pixels on lanes)
    t_ref   : (1, 1, TN)    int16 target tile
    num_ref : (1, 1, 1, TN) per-(batch, superchunk) lane-wise partial sum( w[y]*nll )
    den_ref : (1, 1, 1, TN) per-(batch, superchunk) lane-wise partial sum( w[y] )
    """

    def kernel(x_ref, t_ref, num_ref, den_ref):
        ti = pl.program_id(2)

        @pl.when(ti == 0)
        def _():
            num_ref[...] = jnp.zeros_like(num_ref)
            den_ref[...] = jnp.zeros_like(den_ref)

        x = x_ref[0].astype(jnp.float32)          # (C, TN)  f32 compute
        tgt = t_ref[0].astype(jnp.int32)          # (1, TN)
        C, TN = x.shape

        # Numerically-stable log-sum-exp over the class (sublane) axis.
        m = jnp.max(x, axis=0, keepdims=True)                          # (1, TN)
        lse = m + jnp.log(jnp.sum(jnp.exp(x - m), axis=0, keepdims=True))

        # Gather-free selection of x[y] via one-hot compare + sublane reduce.
        # ignore_index (and any out-of-range label) matches no class, so
        # picked_logit=0 there — harmless since picked_w=0 kills the term.
        cls = lax.broadcasted_iota(jnp.int32, (C, TN), 0)               # (C, TN)
        onehot = cls == tgt                                             # (C, TN) bool
        picked_logit = jnp.sum(jnp.where(onehot, x, 0.0),
                               axis=0, keepdims=True)                   # (1, TN)

        # Per-pixel class weight w[y] from compile-time constants, built on the
        # (1, TN) target row (no (C, TN) broadcast / extra XLU reduce).
        # NOTE: labels outside [0, C) that are not ignore_index get weight 0
        # and drop out (PyTorch would raise) — documented divergence.
        if use_weight:
            picked_w = jnp.zeros_like(tgt, dtype=jnp.float32)           # (1, TN)
            for c, wc in enumerate(weight_vals):
                picked_w = jnp.where(tgt == c, jnp.float32(wc), picked_w)
        else:
            valid = (tgt != ignore_index) & (tgt >= 0) & (tgt < num_classes)
            picked_w = valid.astype(jnp.float32)

        nll = lse - picked_logit                                        # (1, TN)

        num_ref[0, 0] += picked_w * nll
        den_ref[0, 0] += picked_w

    return kernel


def criterion_cross_entropy_o(preds, target, *, use_weight=True,
                              ignore_index=255, upsample=False):
    """JAX/Pallas equivalent of CriterionCrossEntropyo.forward(preds, target).

    preds : sequence whose first element is (B, C, H, W) logits (f32 or bf16)
    target: (B, H, W) integer class labels (ignore_index marks ignored pixels)
    Returns a scalar float32 loss.

    Note: if every pixel is ignore_index the result is NaN (0/0), matching
    PyTorch's weighted-'mean' behavior.
    """
    if upsample:
        # TODO(synk): bilinear upsample with align_corners=True has no exact
        # jax.image.resize equivalent; module default is upsample=False.
        raise NotImplementedError("upsample=True path not implemented")

    logits = preds[0]
    B, C, H, W = logits.shape
    N = H * W
    TN, N_pad = _choose_tile(N)
    n_tiles = N_pad // TN

    # Split the tile axis so v7x's 2 TensorCores get parallel work even at B=1.
    if n_tiles >= 2 and n_tiles % 2 == 0:
        n_super, n_inner = 2, n_tiles // 2
    else:
        n_super, n_inner = 1, n_tiles

    if use_weight:
        if C != len(_CITYSCAPES_WEIGHTS):
            raise ValueError(f"use_weight=True expects C={len(_CITYSCAPES_WEIGHTS)}")
        weight_vals = _CITYSCAPES_WEIGHTS
    else:
        weight_vals = (1.0,) * C

    # Pure reshapes (no HBM transpose): NCHW -> (B, C, N); keep logits in their
    # native dtype (bf16 ingest halves the dominant HBM stream).  Targets go to
    # int16 (class ids and ignore_index=255 fit comfortably).
    x = jnp.reshape(logits, (B, C, N))
    t = jnp.reshape(target.astype(jnp.int16), (B, 1, N))

    if N_pad != N:
        pad = N_pad - N
        x = jnp.pad(x, ((0, 0), (0, 0), (0, pad)))
        t = jnp.pad(t, ((0, 0), (0, 0), (0, pad)),
                    constant_values=jnp.int16(ignore_index))

    kernel = _make_kernel(weight_vals, ignore_index, use_weight, C)

    num_part, den_part = pl.pallas_call(
        kernel,
        out_shape=(
            jax.ShapeDtypeStruct((B, n_super, 1, TN), jnp.float32),
            jax.ShapeDtypeStruct((B, n_super, 1, TN), jnp.float32),
        ),
        grid_spec=pltpu.PrefetchScalarGridSpec(
            num_scalar_prefetch=0,
            grid=(B, n_super, n_inner),
            in_specs=[
                pl.BlockSpec((1, C, TN),
                             lambda b, s, ti: (b, 0, s * n_inner + ti)),  # logits
                pl.BlockSpec((1, 1, TN),
                             lambda b, s, ti: (b, 0, s * n_inner + ti)),  # targets
            ],
            out_specs=[
                pl.BlockSpec((1, 1, 1, TN), lambda b, s, ti: (b, s, 0, 0)),  # num
                pl.BlockSpec((1, 1, 1, TN), lambda b, s, ti: (b, s, 0, 0)),  # den
            ],
        ),
        compiler_params=pltpu.CompilerParams(
            dimension_semantics=("parallel", "parallel", "arbitrary"),
            vmem_limit_bytes=48 * 1024 * 1024,
        ),
    )(x, t)

    # Single trailing cross-lane reduce (deferred out of the kernel's hot loop).
    return jnp.sum(num_part) / jnp.sum(den_part)


def _reference(preds, target, *, use_weight=True, ignore_index=255):
    """Pure-JAX reference of the PyTorch forward, for correctness checking."""
    logits = preds[0]
    B, C, H, W = logits.shape
    weight = (jnp.asarray(_CITYSCAPES_WEIGHTS, jnp.float32)
              if use_weight else jnp.ones((C,), jnp.float32))
    logp = jax.nn.log_softmax(logits.astype(jnp.float32), axis=1)   # (B,C,H,W)
    valid = target != ignore_index
    t_safe = jnp.where(valid, target, 0)
    picked = jnp.take_along_axis(logp, t_safe[:, None, :, :], axis=1)[:, 0]  # (B,H,W)
    w = weight[t_safe] * valid.astype(jnp.float32)
    return jnp.sum(-w * picked) / jnp.sum(w)


def _make_inputs(key, B, C, H, W, dtype=jnp.float32):
    k_logits, k_target, k_ignore = jax.random.split(key, 3)
    logits = jax.random.normal(k_logits, (B, C, H, W), dtype=jnp.float32).astype(dtype)
    target = jax.random.randint(k_target, (B, H, W), 0, C, dtype=jnp.int32)
    ignore_mask = jax.random.bernoulli(k_ignore, 0.1, (B, H, W))
    target = jnp.where(ignore_mask, 255, target)
    return [logits], target


if __name__ == "__main__":
    key = jax.random.PRNGKey(0)
    k1, k2 = jax.random.split(key)

    # --- Case 1: default module config, f32 logits, tile-aligned resolution ---
    B, C, H, W = 2, 19, 16, 16   # C must be 19 to match the module's weight vector
    preds, target = _make_inputs(k1, B, C, H, W, dtype=jnp.float32)
    loss = jax.block_until_ready(criterion_cross_entropy_o(preds, target))
    ref = _reference(preds, target)
    assert jnp.allclose(loss, ref, rtol=1e-5, atol=1e-6), (loss, ref)

    # --- Case 2: bf16 logit ingest (halves dominant HBM stream) ---
    preds_bf16 = [preds[0].astype(jnp.bfloat16)]
    loss_bf16 = jax.block_until_ready(criterion_cross_entropy_o(preds_bf16, target))
    ref_bf16 = _reference(preds_bf16, target)
    assert jnp.allclose(loss_bf16, ref_bf16, rtol=1e-4, atol=1e-5), (loss_bf16, ref_bf16)

    # --- Case 3: non-tile-aligned resolution (padded path) + B=1 + use_weight=False ---
    preds2, target2 = _make_inputs(k2, 1, 19, 17, 19, dtype=jnp.float32)
    loss2 = jax.block_until_ready(
        criterion_cross_entropy_o(preds2, target2, use_weight=False))
    ref2 = _reference(preds2, target2, use_weight=False)
    assert jnp.allclose(loss2, ref2, rtol=1e-5, atol=1e-6), (loss2, ref2)

    print("KERNEL_OK")
</pallas_src>

<mosaic_0001>
module attributes {stable_mosaic.version = 11 : i64} {
  func.func @kernel(%arg0: i32, %arg1: i32, %arg2: i32, %arg3: memref<1x19x256xf32, #tpu.memory_space<vmem>>, %arg4: memref<1x1x256xi16, #tpu.memory_space<vmem>>, %arg5: memref<1x1x1x256xf32, #tpu.memory_space<vmem>>, %arg6: memref<1x1x1x256xf32, #tpu.memory_space<vmem>>) attributes {dimension_semantics = [#tpu.dimension_semantics<parallel>, #tpu.dimension_semantics<parallel>, #tpu.dimension_semantics<arbitrary>], iteration_bounds = array<i64: 2, 1, 1>, scalar_prefetch = 0 : i64, scratch_operands = 0 : i64, tpu.core_type = #tpu.core_type<tc>, window_params = [{transform_indices = @transform_0, window_bounds = array<i64: 1, 19, 256>}, {transform_indices = @transform_1, window_bounds = array<i64: 1, 1, 256>}, {transform_indices = @transform_2, window_bounds = array<i64: 1, 1, 1, 256>}, {transform_indices = @transform_3, window_bounds = array<i64: 1, 1, 1, 256>}]} {
    %c0_i32 = arith.constant 0 : i32
    %0 = arith.cmpi eq, %arg2, %c0_i32 : i32
    %1 = arith.extui %0 : i1 to i32
    %c0_i32_0 = arith.constant 0 : i32
    %2 = arith.cmpi ne, %1, %c0_i32_0 : i32
    scf.if %2 {
      %cst_46 = arith.constant 0.000000e+00 : f32
      %115 = vector.broadcast %cst_46 : f32 to vector<1x1x1x256xf32>
      %c0_47 = arith.constant 0 : index
      %c0_48 = arith.constant 0 : index
      %c0_49 = arith.constant 0 : index
      %c0_50 = arith.constant 0 : index
      %116 = vector.load %arg5[%c0_47, %c0_48, %c0_49, %c0_50] : memref<1x1x1x256xf32, #tpu.memory_space<vmem>>, vector<1x1x1x256xf32>
      tpu.vector_store %arg5[%c0_47, %c0_48, %c0_49, %c0_50], %115 {strides = array<i32>} : memref<1x1x1x256xf32, #tpu.memory_space<vmem>>, vector<1x1x1x256xf32>,
      %cst_51 = arith.constant 0.000000e+00 : f32
      %117 = vector.broadcast %cst_51 : f32 to vector<1x1x1x256xf32>
      %c0_52 = arith.constant 0 : index
      %c0_53 = arith.constant 0 : index
      %c0_54 = arith.constant 0 : index
      %c0_55 = arith.constant 0 : index
      %118 = vector.load %arg6[%c0_52, %c0_53, %c0_54, %c0_55] : memref<1x1x1x256xf32, #tpu.memory_space<vmem>>, vector<1x1x1x256xf32>
      tpu.vector_store %arg6[%c0_52, %c0_53, %c0_54, %c0_55], %117 {strides = array<i32>} : memref<1x1x1x256xf32, #tpu.memory_space<vmem>>, vector<1x1x1x256xf32>,
    } else {
    }
    %c0 = arith.constant 0 : index
    %c0_1 = arith.constant 0 : index
    %c0_2 = arith.constant 0 : index
    %3 = vector.load %arg3[%c0, %c0_1, %c0_2] : memref<1x19x256xf32, #tpu.memory_space<vmem>>, vector<1x19x256xf32>
    %4 = vector.shape_cast %3 : vector<1x19x256xf32> to vector<19x256xf32>
    %c0_3 = arith.constant 0 : index
    %c0_4 = arith.constant 0 : index
    %c0_5 = arith.constant 0 : index
    %5 = vector.load %arg4[%c0_3, %c0_4, %c0_5] : memref<1x1x256xi16, #tpu.memory_space<vmem>>, vector<1x1x256xi16>
    %6 = vector.shape_cast %5 : vector<1x1x256xi16> to vector<1x256xi16>
    %7 = arith.extsi %6 : vector<1x256xi16> to vector<1x256xi32>
    %cst = arith.constant dense<0xFF800000> : vector<256xf32>
    %8 = vector.multi_reduction <maximumf>, %4, %cst [0] : vector<19x256xf32> to vector<256xf32>
    %9 = vector.shape_cast %8 : vector<256xf32> to vector<1x256xf32>
    %10 = vector.broadcast %9 : vector<1x256xf32> to vector<19x256xf32>
    %11 = arith.subf %4, %10 : vector<19x256xf32>
    %12 = math.exp %11 : vector<19x256xf32>
    %cst_6 = arith.constant dense<0.000000e+00> : vector<256xf32>
    %13 = vector.multi_reduction <add>, %12, %cst_6 [0] : vector<19x256xf32> to vector<256xf32>
    %14 = vector.shape_cast %13 : vector<256xf32> to vector<1x256xf32>
    %15 = math.log %14 : vector<1x256xf32>
    %16 = arith.addf %9, %15 : vector<1x256xf32>
    %17 = tpu.iota {dimensions = array<i32: 0>} : vector<19x256xi32>
    %18 = vector.broadcast %7 : vector<1x256xi32> to vector<19x256xi32>
    %19 = arith.cmpi eq, %17, %18 : vector<19x256xi32>
    %cst_7 = arith.constant 0.000000e+00 : f32
    %20 = vector.broadcast %cst_7 : f32 to vector<19x256xf32>
    %21 = arith.select %19, %4, %20 : vector<19x256xi1>, vector<19x256xf32>
    %cst_8 = arith.constant dense<0.000000e+00> : vector<256xf32>
    %22 = vector.multi_reduction <add>, %21, %cst_8 [0] : vector<19x256xf32> to vector<256xf32>
    %23 = vector.shape_cast %22 : vector<256xf32> to vector<1x256xf32>
    %cst_9 = arith.constant 0.000000e+00 : f32
    %24 = vector.broadcast %cst_9 : f32 to vector<1x256xf32>
    %c0_i32_10 = arith.constant 0 : i32
    %25 = vector.broadcast %c0_i32_10 : i32 to vector<1x256xi32>
    %26 = arith.cmpi eq, %7, %25 : vector<1x256xi32>
    %cst_11 = arith.constant 8.194000e-01 : f32
    %27 = vector.broadcast %cst_11 : f32 to vector<1x256xf32>
    %28 = arith.select %26, %27, %24 : vector<1x256xi1>, vector<1x256xf32>
    %c1_i32 = arith.constant 1 : i32
    %29 = vector.broadcast %c1_i32 : i32 to vector<1x256xi32>
    %30 = arith.cmpi eq, %7, %29 : vector<1x256xi32>
    %cst_12 = arith.constant 0.894599974 : f32
    %31 = vector.broadcast %cst_12 : f32 to vector<1x256xf32>
    %32 = arith.select %30, %31, %28 : vector<1x256xi1>, vector<1x256xf32>
    %c2_i32 = arith.constant 2 : i32
    %33 = vector.broadcast %c2_i32 : i32 to vector<1x256xi32>
    %34 = arith.cmpi eq, %7, %33 : vector<1x256xi32>
    %cst_13 = arith.constant 9.416000e-01 : f32
    %35 = vector.broadcast %cst_13 : f32 to vector<1x256xf32>
    %36 = arith.select %34, %35, %32 : vector<1x256xi1>, vector<1x256xf32>
    %c3_i32 = arith.constant 3 : i32
    %37 = vector.broadcast %c3_i32 : i32 to vector<1x256xi32>
    %38 = arith.cmpi eq, %7, %37 : vector<1x256xi32>
    %cst_14 = arith.constant 1.009100e+00 : f32
    %39 = vector.broadcast %cst_14 : f32 to vector<1x256xf32>
    %40 = arith.select %38, %39, %36 : vector<1x256xi1>, vector<1x256xf32>
    %c4_i32 = arith.constant 4 : i32
    %41 = vector.broadcast %c4_i32 : i32 to vector<1x256xi32>
    %42 = arith.cmpi eq, %7, %41 : vector<1x256xi32>
    %cst_15 = arith.constant 9.925000e-01 : f32
    %43 = vector.broadcast %cst_15 : f32 to vector<1x256xf32>
    %44 = arith.select %42, %43, %40 : vector<1x256xi1>, vector<1x256xf32>
    %c5_i32 = arith.constant 5 : i32
    %45 = vector.broadcast %c5_i32 : i32 to vector<1x256xi32>
    %46 = arith.cmpi eq, %7, %45 : vector<1x256xi32>
    %cst_16 = arith.constant 0.973999977 : f32
    %47 = vector.broadcast %cst_16 : f32 to vector<1x256xf32>
    %48 = arith.select %46, %47, %44 : vector<1x256xi1>, vector<1x256xf32>
    %c6_i32 = arith.constant 6 : i32
    %49 = vector.broadcast %c6_i32 : i32 to vector<1x256xi32>
    %50 = arith.cmpi eq, %7, %49 : vector<1x256xi32>
    %cst_17 = arith.constant 1.080400e+00 : f32
    %51 = vector.broadcast %cst_17 : f32 to vector<1x256xf32>
    %52 = arith.select %50, %51, %48 : vector<1x256xi1>, vector<1x256xf32>
    %c7_i32 = arith.constant 7 : i32
    %53 = vector.broadcast %c7_i32 : i32 to vector<1x256xi32>
    %54 = arith.cmpi eq, %7, %53 : vector<1x256xi32>
    %cst_18 = arith.constant 1.019200e+00 : f32
    %55 = vector.broadcast %cst_18 : f32 to vector<1x256xf32>
    %56 = arith.select %54, %55, %52 : vector<1x256xi1>, vector<1x256xf32>
    %c8_i32 = arith.constant 8 : i32
    %57 = vector.broadcast %c8_i32 : i32 to vector<1x256xi32>
    %58 = arith.cmpi eq, %7, %57 : vector<1x256xi32>
    %cst_19 = arith.constant 8.528000e-01 : f32
    %59 = vector.broadcast %cst_19 : f32 to vector<1x256xf32>
    %60 = arith.select %58, %59, %56 : vector<1x256xi1>, vector<1x256xf32>
    %c9_i32 = arith.constant 9 : i32
    %61 = vector.broadcast %c9_i32 : i32 to vector<1x256xi32>
    %62 = arith.cmpi eq, %7, %61 : vector<1x256xi32>
    %cst_20 = arith.constant 9.771000e-01 : f32
    %63 = vector.broadcast %cst_20 : f32 to vector<1x256xf32>
    %64 = arith.select %62, %63, %60 : vector<1x256xi1>, vector<1x256xf32>
    %c10_i32 = arith.constant 10 : i32
    %65 = vector.broadcast %c10_i32 : i32 to vector<1x256xi32>
    %66 = arith.cmpi eq, %7, %65 : vector<1x256xi32>
    %cst_21 = arith.constant 9.139000e-01 : f32
    %67 = vector.broadcast %cst_21 : f32 to vector<1x256xf32>
    %68 = arith.select %66, %67, %64 : vector<1x256xi1>, vector<1x256xf32>
    %c11_i32 = arith.constant 11 : i32
    %69 = vector.broadcast %c11_i32 : i32 to vector<1x256xi32>
    %70 = arith.cmpi eq, %7, %69 : vector<1x256xi32>
    %cst_22 = arith.constant 0.974399983 : f32
    %71 = vector.broadcast %cst_22 : f32 to vector<1x256xf32>
    %72 = arith.select %70, %71, %68 : vector<1x256xi1>, vector<1x256xf32>
    %c12_i32 = arith.constant 12 : i32
    %73 = vector.broadcast %c12_i32 : i32 to vector<1x256xi32>
    %74 = arith.cmpi eq, %7, %73 : vector<1x256xi32>
    %cst_23 = arith.constant 1.109800e+00 : f32
    %75 = vector.broadcast %cst_23 : f32 to vector<1x256xf32>
    %76 = arith.select %74, %75, %72 : vector<1x256xi1>, vector<1x256xf32>
    %c13_i32 = arith.constant 13 : i32
    %77 = vector.broadcast %c13_i32 : i32 to vector<1x256xi32>
    %78 = arith.cmpi eq, %7, %77 : vector<1x256xi32>
    %cst_24 = arith.constant 8.883000e-01 : f32
    %79 = vector.broadcast %cst_24 : f32 to vector<1x256xf32>
    %80 = arith.select %78, %79, %76 : vector<1x256xi1>, vector<1x256xf32>
    %c14_i32 = arith.constant 14 : i32
    %81 = vector.broadcast %c14_i32 : i32 to vector<1x256xi32>
    %82 = arith.cmpi eq, %7, %81 : vector<1x256xi32>
    %cst_25 = arith.constant 1.063900e+00 : f32
    %83 = vector.broadcast %cst_25 : f32 to vector<1x256xf32>
    %84 = arith.select %82, %83, %80 : vector<1x256xi1>, vector<1x256xf32>
    %c15_i32 = arith.constant 15 : i32
    %85 = vector.broadcast %c15_i32 : i32 to vector<1x256xi32>
    %86 = arith.cmpi eq, %7, %85 : vector<1x256xi32>
    %cst_26 = arith.constant 1.247600e+00 : f32
    %87 = vector.broadcast %cst_26 : f32 to vector<1x256xf32>
    %88 = arith.select %86, %87, %84 : vector<1x256xi1>, vector<1x256xf32>
    %c16_i32 = arith.constant 16 : i32
    %89 = vector.broadcast %c16_i32 : i32 to vector<1x256xi32>
    %90 = arith.cmpi eq, %7, %89 : vector<1x256xi32>
    %cst_27 = arith.constant 1.072900e+00 : f32
    %91 = vector.broadcast %cst_27 : f32 to vector<1x256xf32>
    %92 = arith.select %90, %91, %88 : vector<1x256xi1>, vector<1x256xf32>
    %c17_i32 = arith.constant 17 : i32
    %93 = vector.broadcast %c17_i32 : i32 to vector<1x256xi32>
    %94 = arith.cmpi eq, %7, %93 : vector<1x256xi32>
    %cst_28 = arith.constant 1.132300e+00 : f32
    %95 = vector.broadcast %cst_28 : f32 to vector<1x256xf32>
    %96 = arith.select %94, %95, %92 : vector<1x256xi1>, vector<1x256xf32>
    %c18_i32 = arith.constant 18 : i32
    %97 = vector.broadcast %c18_i32 : i32 to vector<1x256xi32>
    %98 = arith.cmpi eq, %7, %97 : vector<1x256xi32>
    %cst_29 = arith.constant 1.036500e+00 : f32
    %99 = vector.broadcast %cst_29 : f32 to vector<1x256xf32>
    %100 = arith.select %98, %99, %96 : vector<1x256xi1>, vector<1x256xf32>
    %101 = arith.subf %16, %23 : vector<1x256xf32>
    %c0_30 = arith.constant 0 : index
    %c0_31 = arith.constant 0 : index
    %c0_32 = arith.constant 0 : index
    %c0_33 = arith.constant 0 : index
    %102 = vector.load %arg5[%c0_30, %c0_31, %c0_32, %c0_33] : memref<1x1x1x256xf32, #tpu.memory_space<vmem>>, vector<1x1x1x256xf32>
    %103 = vector.shape_cast %102 : vector<1x1x1x256xf32> to vector<1x256xf32>
    %104 = arith.mulf %100, %101 : vector<1x256xf32>
    %105 = arith.addf %103, %104 : vector<1x256xf32>
    %c0_34 = arith.constant 0 : index
    %c0_35 = arith.constant 0 : index
    %c0_36 = arith.constant 0 : index
    %c0_37 = arith.constant 0 : index
    %106 = vector.load %arg5[%c0_34, %c0_35, %c0_36, %c0_37] : memref<1x1x1x256xf32, #tpu.memory_space<vmem>>, vector<1x1x1x256xf32>
    %107 = vector.shape_cast %106 : vector<1x1x1x256xf32> to vector<1x256xf32>
    %108 = vector.shape_cast %105 : vector<1x256xf32> to vector<1x1x1x256xf32>
    tpu.vector_store %arg5[%c0_34, %c0_35, %c0_36, %c0_37], %108 {strides = array<i32>} : memref<1x1x1x256xf32, #tpu.memory_space<vmem>>, vector<1x1x1x256xf32>,
    %c0_38 = arith.constant 0 : index
    %c0_39 = arith.constant 0 : index
    %c0_40 = arith.constant 0 : index
    %c0_41 = arith.constant 0 : index
    %109 = vector.load %arg6[%c0_38, %c0_39, %c0_40, %c0_41] : memref<1x1x1x256xf32, #tpu.memory_space<vmem>>, vector<1x1x1x256xf32>
    %110 = vector.shape_cast %109 : vector<1x1x1x256xf32> to vector<1x256xf32>
    %111 = arith.addf %110, %100 : vector<1x256xf32>
    %c0_42 = arith.constant 0 : index
    %c0_43 = arith.constant 0 : index
    %c0_44 = arith.constant 0 : index
    %c0_45 = arith.constant 0 : index
    %112 = vector.load %arg6[%c0_42, %c0_43, %c0_44, %c0_45] : memref<1x1x1x256xf32, #tpu.memory_space<vmem>>, vector<1x1x1x256xf32>
    %113 = vector.shape_cast %112 : vector<1x1x1x256xf32> to vector<1x256xf32>
    %114 = vector.shape_cast %111 : vector<1x256xf32> to vector<1x1x1x256xf32>
    tpu.vector_store %arg6[%c0_42, %c0_43, %c0_44, %c0_45], %114 {strides = array<i32>} : memref<1x1x1x256xf32, #tpu.memory_space<vmem>>, vector<1x1x1x256xf32>,
    return
  }
  func.func @transform_0(%arg0: i32, %arg1: i32, %arg2: i32) -> (i32, i32, i32) {
    %c1_i32 = arith.constant 1 : i32
    %0 = arith.muli %arg1, %c1_i32 : i32
    %1 = arith.addi %0, %arg2 : i32
    %c0_i32 = arith.constant 0 : i32
    %c0_i32_0 = arith.constant 0 : i32
    return %arg0, %c0_i32, %1 : i32, i32, i32
  }
  func.func @transform_1(%arg0: i32, %arg1: i32, %arg2: i32) -> (i32, i32, i32) {
    %c1_i32 = arith.constant 1 : i32
    %0 = arith.muli %arg1, %c1_i32 : i32
    %1 = arith.addi %0, %arg2 : i32
    %c0_i32 = arith.constant 0 : i32
    %c0_i32_0 = arith.constant 0 : i32
    return %arg0, %c0_i32, %1 : i32, i32, i32
  }
  func.func @transform_2(%arg0: i32, %arg1: i32, %arg2: i32) -> (i32, i32, i32, i32) {
    %c0_i32 = arith.constant 0 : i32
    %c0_i32_0 = arith.constant 0 : i32
    %c0_i32_1 = arith.constant 0 : i32
    return %arg0, %arg1, %c0_i32, %c0_i32_0 : i32, i32, i32, i32
  }
  func.func @transform_3(%arg0: i32, %arg1: i32, %arg2: i32) -> (i32, i32, i32, i32) {
    %c0_i32 = arith.constant 0 : i32
    %c0_i32_0 = arith.constant 0 : i32
    %c0_i32_1 = arith.constant 0 : i32
    return %arg0, %arg1, %c0_i32, %c0_i32_0 : i32, i32, i32, i32
  }
}

</mosaic_0001>

<bundles_post_ra>
// kernel: tpu_custom_call.1
= control target key start
LH: loop header
LB: loop body
LE: loop exit
PB: predicated region body
PF: predicated region fallthrough
CT: control target
= control target key end

     0   :  { %9 = vsyncpa [#allocation3], 0  ;;  %s1145_s0 = inlined_call_operand.vmem [shape: f32[2,19,256], index: 0, kind: input, shape index: {}]   ;;  %s1146_s1 = inlined_call_operand.vmem [shape: s16[2,1,256], index: 1, kind: input, shape index: {}]   ;;  %s1147_s2 = inlined_call_operand.hbm [shape: f32[2,1,1,256], index: 2, kind: output, shape index: {0}]   ;;  %s1148_s3 = inlined_call_operand.hbm [shape: f32[2,1,1,256], index: 3, kind: output, shape index: {1}]  }
   0x1   :  { %11 = vsyncpa [#allocation3 + $0x1], 0 }
   0x2   :  { %12 = vsyncpa [#allocation5], 0 }
   0x3   :  { %14 = vsyncpa [#allocation5 + $0x1], 0  ;;  %s878_s12 = smov 0   ;;  %s880_s13 = smov 0  }
   0x4   :  { %s882_s14 = smov 0   ;;  %s884_s15 = smov 0  }
   0x5   :  { %s886_s16 = smov 0   ;;  %s888_s17 = smov 0  }
   0x6 LB: > { %s642_s18 = sadd.s32 4294967295, %s851_s17   ;;  %s643_s19 = sadd.s32 4294967294, %s851_s17   ;;  %s851_s17 = sphi %s888_s17, %s20_s17   ;;  %s847_s16 = sphi %s886_s16, %s1157_s16   ;;  %s843_s15 = sphi %s884_s15, %s1156_s15   ;;  %s839_s14 = sphi %s882_s14, %s1155_s14   ;;  %s835_s13 = sphi %s880_s13, %s1154_s13   ;;  %s831_s12 = sphi %s878_s12, %s1153_s12  }
   0x7   : > { %s39_s20 = sadd.s32 1, %s847_s16  ;;  %s108_s21 = sadd.s32 1, %s839_s14 }
   0x8   : > { %p41_p0 = scmp.ge.s32.totalorder %s39_s20, 2  ;;  %p118_p1 = scmp.ne.s32.totalorder %s839_s14, %s835_s13 }
   0x9   : > { %p119_p2 = scmp.eq.s32.totalorder %s642_s18, 1  ;;  %p124_p3 = scmp.ne.s32.totalorder %s835_s13, %s831_s12 }
   0xa   : > { %s1159_s20 = smov (%p41_p0, %s39_s20), 0  ;;  %p125_p5 = scmp.eq.s32.totalorder %s643_s19, 1 }
   0xb   : > { %p918_p4 = por %p119_p2, %p118_p1  ;;  %s103_s23 = ssub.s32 %s847_s16, %s1159_s20 }
   0xc   : > { %p646_p6 = scmp.ge.s32.totalorder %s851_s17, 1  ;;  %p106_p7 = scmp.eq.s32.totalorder %s103_s23, 0 }
   0xd   : > { %p925_p8 = por %p125_p5, %p124_p3  ;;  %p200_p9 = scmp.lt.s32.totalorder %s851_s17, 3 }
   0xe   : > { %s931_s25 = scalar_select %p106_p7, %s839_s14, %s108_s21  }
   0xf   : > { %p201_p10 = pnand %p646_p6, %p200_p9 }
  0x10   : > { %s934_s26 = sand.u32 (!%p201_p10), 1, %s835_s13   ;;  %p245_p11 = scmp.lt.s32.totalorder (!%p201_p10), %s843_s15, 1  ;;  %v270_v0 = vlaneseq (!%p201_p10)  ;;  %v853_v2 = vmov (!%p201_p10), 0.0   ;;  %vm284_vm5 = vcmask (!%p201_p10), 1042432   ;;  %v854_v29 = vmov (!%p201_p10), 1966171168  }
  0x11   : > { %204 = sbr.rel (%p201_p10) target bundleno = 137 (0x89), region = 28  ;;  %s647_s27 = sshll.u32 (!%p201_p10), %s934_s26, 1  ;;  %v450_v30 = vunpack.c.l.s4 (!%p201_p10), %v854_v29 }
  0x12   : > { %vm939_vm0 = vcmp.lt.s32.totalorder (!%p201_p10), %v270_v0, 256  ;;  %s944_s29 = scalar_lea.vmem (!%p201_p10), [#allocation2], %s647_s27  ;;  %s949_s30 = scalar_lea.vmem (!%p201_p10), [#allocation4], %s647_s27  ;;  %v999_v42 = vshrl.u32 (!%p201_p10), %v270_v0, 7 }
  0x13   : > { %274 = vst.msk [vmem:[%s944_s29] sm:$0x3] (!%p201_p10), %vm939_vm0, %v853_v2  ;;  %275 = vst.msk [vmem:[%s949_s30] sm:$0x3] (!%p201_p10), %vm939_vm0, %v853_v2  ;;  %v451_v38 = vunpack.c.0.s8 (!%p201_p10), %v450_v30  ;;  %s659_s18 = sshll.u32 (!%p201_p10), %s843_s15, 5  ;;  %s513_s19 = sshll.u32 (!%p201_p10), %s949_s30, 4  ;;  %s1041_s19 = int_to_ptr.vmem [resolvable:$true] %s513_s19 }
  0x14   : > { %v351_v52 = vsub.s32 (!%p201_p10), 0, %v999_v42  ;;  %v355_v53 = vsub.s32 (!%p201_p10), 2, %v999_v42  ;;  %s1039_s27 = scalar_lea.hbm (!%p201_p10), %s1148_s3, %s659_s18 }
  0x15   : > { %v1004_v48 = vsub.s32 (!%p201_p10), %v451_v38, %v999_v42 }
  0x18   : > { %s246_s28 = scalar_select %p245_p11, %s843_s15, 1 }
  0x1a   : > { %s650_s4 = sshll.u32 %s246_s28, 1  ;;  %s661_s5 = smul.u32 48, %s246_s28  ;;  %v463_v61 = vld [vmem:[%s949_s30] sm:$0x3] }
  0x1b   : > { %s263_s8 = scalar_lea.vmem %s1146_s1, %s650_s4  ;;  %s481_s28 = scalar_lea.sflag [#allocation5], %s934_s26 }
  0x1c   : > { %v282_v3 = vld [vmem:[%s263_s8] sm:$0x3]  ;;  %s252_s11 = scalar_lea.vmem %s1145_s0, %s661_s5  ;;  %s741_s4 = scalar_lea.vmem %s1041_s19, 32 }
  0x1d   : > { %v960_v4 = vunpack.c.l.b16 %v282_v3  ;;  %v965_v5 = vld [vmem:[%s252_s11 + $0x20] sm:$0x7]  ;;  %v968_v7 = vld [vmem:[%s252_s11 + $0x28] sm:$0x7]  ;;  %v976_v12 = vld [vmem:[%s252_s11 + $0x10] sm:$0xff]  ;;  %p742_p12 = scmp.ne.s32.totalorder %s1041_s19, %s741_s4  ;;  %s855_s5 = smov [#allocation4]  }
  0x1e   : > { %v971_v9 = vld [vmem:[%s252_s11] sm:$0xff]  ;;  %v973_v10 = vld [vmem:[%s252_s11 + $0x8] sm:$0xff]  ;;  %v979_v14 = vld [vmem:[%s252_s11 + $0x18] sm:$0xff]  ;;  %v285_v15 = vsel %vm284_vm5, %v965_v5, -inf  ;;  %v294_v16 = vsel %vm284_vm5, %v968_v7, -inf  ;;  %s745_s6 = sshll.u32 %s855_s5, 4  ;;  %s746_s6 = int_to_ptr.vmem [resolvable:$false] %s745_s6 }
  0x1f   : > { %vm395_vm1 = vcmp.eq.s32.totalorder %v960_v4, 0  ;;  %vm397_vm2 = vcmp.eq.s32.totalorder %v960_v4, 1  ;;  %vm399_vm3 = vcmp.eq.s32.totalorder %v960_v4, 2  ;;  %vm401_vm4 = vcmp.eq.s32.totalorder %v960_v4, 3  ;;  %p743_p13 = pnand %p742_p12, %p918_p4  ;;  %s747_s7 = scalar_lea.vmem %s746_s6, 64 }
  0x20   : > { %v396_v6 = vsel %vm395_vm1, 0.8194, %v853_v2  ;;  %vm403_vm6 = vcmp.eq.s32.totalorder %v960_v4, 4  ;;  %vm405_vm7 = vcmp.eq.s32.totalorder %v960_v4, 5  ;;  %vm407_vm8 = vcmp.eq.s32.totalorder %v960_v4, 6  ;;  %p748_p1 = scmp.lt.s32.totalorder %s1041_s19, %s746_s6  ;;  %p749_p2 = scmp.lt.s32.totalorder %s747_s7, %s741_s4 }
  0x21   : > { %v398_v8 = vsel %vm397_vm2, 0.8946, %v396_v6  ;;  %vm409_vm9 = vcmp.eq.s32.totalorder %v960_v4, 7  ;;  %v286_v18 = vmax.f32 %v971_v9, %v285_v15  ;;  %v295_v19 = vmax.f32 %v973_v10, %v294_v16  ;;  %p744_p0 = pneg %p743_p13 }
  0x22   : > { %v400_v11 = vsel %vm399_vm3, 0.9416, %v398_v8  ;;  %vm411_vm10 = vcmp.eq.s32.totalorder %v960_v4, 8  ;;  %vm413_vm11 = vcmp.eq.s32.totalorder %v960_v4, 9  ;;  %vm415_vm12 = vcmp.eq.s32.totalorder %v960_v4, 10  ;;  %p750_p3 = por %p749_p2, %p748_p1 }
  0x23   : > { %v402_v13 = vsel %vm401_vm4, 1.0091, %v400_v11  ;;  %v287_v22 = vmax.f32 %v286_v18, %v976_v12  ;;  %v296_v23 = vmax.f32 %v295_v19, %v979_v14  ;;  %vm417_vm13 = vcmp.eq.s32.totalorder %v960_v4, 11 }
  0x24   : > { %v404_v17 = vsel %vm403_vm6, 0.9925, %v402_v13  ;;  %vm419_vm14 = vcmp.eq.s32.totalorder %v960_v4, 12  ;;  %vm421_vm15 = vcmp.eq.s32.totalorder %v960_v4, 13  ;;  %vm423_vm1 = vcmp.eq.s32.totalorder %v960_v4, 14  ;;  %p751_p5 = pnand %p750_p3, %p744_p0 }
  0x25   : > { %v406_v20 = vsel %vm405_vm7, 0.974, %v404_v17  ;;  %v288_v26 = vrot.slane %v287_v22, 4  ;;  %v297_v27 = vrot.slane %v296_v23, 4  ;;  %vm425_vm2 = vcmp.eq.s32.totalorder %v960_v4, 15 }
  0x26   : > { %v408_v21 = vsel %vm407_vm8, 1.0804, %v406_v20  ;;  %vm427_vm3 = vcmp.eq.s32.totalorder %v960_v4, 16  ;;  %vm429_vm4 = vcmp.eq.s32.totalorder %v960_v4, 17  ;;  %vm431_vm6 = vcmp.eq.s32.totalorder %v960_v4, 18 }
  0x27   : > { %v410_v24 = vsel %vm409_vm9, 1.0192, %v408_v21  ;;  %v289_v32 = vmax.f32 %v287_v22, %v288_v26  ;;  %v298_v33 = vmax.f32 %v296_v23, %v297_v27  ;;  %v352_v6 = vrot.slane %v960_v4, %v351_v52 }
  0x28   : > { %v412_v25 = vsel %vm411_vm10, 0.8528, %v410_v24  ;;  %v356_v11 = vrot.slane %v960_v4, %v355_v53  ;;  %v347_v4 = vadd.s32 8, %v999_v42 }
  0x29   : > { %v414_v28 = vsel %vm413_vm11, 0.9771, %v412_v25  ;;  %v290_v36 = vrot.slane %v289_v32, 2  ;;  %v299_v37 = vrot.slane %v298_v33, 2  ;;  %v360_v16 = vrot.slane %v352_v6, %v351_v52 }
  0x2a   : > { %v416_v31 = vsel %vm415_vm12, 0.9139, %v414_v28 }
  0x2b   : > { %v418_v34 = vsel %vm417_vm13, 0.9744, %v416_v31  ;;  %v291_v39 = vmax.f32 %v289_v32, %v290_v36  ;;  %v300_v40 = vmax.f32 %v298_v33, %v299_v37 }
  0x2c   : > { %v420_v35 = vsel %vm419_vm14, 1.1098, %v418_v34 }
  0x2d   : > { %v422_v41 = vsel %vm421_vm15, 0.8883, %v420_v35  ;;  %v292_v44 = vrot.slane %v291_v39, 1  ;;  %v301_v45 = vrot.slane %v300_v40, 1 }
  0x2e   : > { %v424_v43 = vsel %vm423_vm1, 1.0639, %v422_v41 }
  0x2f   : > { %v426_v46 = vsel %vm425_vm2, 1.2476, %v424_v43  ;;  %v1006_v49 = vmax.f32 %v291_v39, %v292_v44  ;;  %v1008_v50 = vmax.f32 %v300_v40, %v301_v45 }
  0x30   : > { %v428_v47 = vsel %vm427_vm3, 1.0729, %v426_v46 }
  0x31   : > { %v430_v51 = vsel %vm429_vm4, 1.1323, %v428_v47  ;;  %v303_v54 = vsub.f32 %v971_v9, %v1006_v49  ;;  %v304_v55 = vsub.f32 %v973_v10, %v1008_v50  ;;  %v305_v56 = vsub.f32 %v976_v12, %v1006_v49 }
  0x32   : > { %v306_v57 = vsub.f32 %v979_v14, %v1008_v50  ;;  %v307_v58 = vsub.f32 %v965_v5, %v1006_v49  ;;  %v308_v59 = vsub.f32 %v968_v7, %v1008_v50  ;;  %v1025_v60 = vsel %vm431_vm6, 1.0365, %v430_v51 }
  0x33   : > { %v309_v62 = vmul.f32 1.442695, %v303_v54  ;;  %v311_v63 = vmul.f32 1.442695, %v304_v55  ;;  %v313_v0 = vmul.f32 1.442695, %v305_v56  ;;  %v471_v2 = vrot.slane %v1025_v60, %v1004_v48 }
  0x34   : > { %v315_v3 = vmul.f32 1.442695, %v306_v57  ;;  %v317_v8 = vmul.f32 1.442695, %v307_v58  ;;  %v319_v15 = vmul.f32 1.442695, %v308_v59 }
  0x35   : > { %725 = vpow2.f32 %v309_v62  ;;  %v473_v13 = vadd.f32 %v471_v2, %v463_v61 }
  0x36   : > { %727 = vpow2.f32 %v311_v63 }
  0x37   : > { %729 = vpow2.f32 %v313_v0  ;;  %474 = vst.msk [vmem:[%s949_s30] sm:$0x3] %vm939_vm0, %v473_v13 }
  0x38   : > { %731 = vpow2.f32 %v315_v3 }
  0x39   : > { %754 = shalt.err (!%p751_p5)
}
  0x3a   : > { %s755_s30 = scalar_lea.hbm %s1039_s27, 32  ;;  %s759_s10 = scalar_lea.hbm %s1148_s3, 64 }
  0x3b   : > { %p756_p6 = scmp.ne.s32.totalorder %s1039_s27, %s755_s30  ;;  %p760_p10 = scmp.lt.u32.totalorder %s1039_s27, %s1148_s3 }
  0x3c   : > { %p761_p11 = scmp.lt.u32.totalorder %s759_s10, %s755_s30  ;;  %p763_p13 = scmp.lt.u32.totalorder %s755_s30, %s1039_s27 }
  0x3d   : > { %p757_p7 = pnand %p756_p6, %p918_p4 }
  0x3e   : > { %p762_p12 = por %p761_p11, %p760_p10 }
  0x3f   : > { %p758_p9 = pneg %p757_p7 }
  0x40   : > { %p764_p0 = por %p763_p13, %p762_p12 }
  0x42   : > { %p765_p1 = pnand %p764_p0, %p758_p9 }
  0x44   : > { %768 = shalt.err (!%p765_p1)
}
  0x45   : > { %663 = dma.vmem_to_hbm [thread:$0]  (%p918_p4), %s1041_s19, 32, %s1039_s27, %s481_s28   ;;  %733 = vpow2.f32 %v317_v8  ;;  %v348_v17 = vadd.s32 16, %v999_v42  ;;  %v364_v18 = vrot.slane %v356_v11, %v351_v52  ;;  %vm365_vm7 = vcmp.eq.s32.totalorder %v999_v42, %v360_v16  ;;  %v726_v19 = vpop.eup %725 }
  0x46   : > { %735 = vpow2.f32 %v319_v15  ;;  %vm367_vm8 = vcmp.eq.s32.totalorder %v347_v4, %v360_v16  ;;  %v371_v20 = vsel %vm365_vm7, %v971_v9, 0.0  ;;  %v728_v22 = vpop.eup %727  ;;  %v856_v0 = vmov 1983009808   ;;  %s497_s19 = sshll.u32 %s944_s29, 4  ;;  %s1094_s28 = scalar_lea.hbm %s1147_s2, %s659_s18  ;;  %s1096_s19 = int_to_ptr.vmem [resolvable:$true] %s497_s19 }
  0x47   : > { %vm366_vm9 = vcmp.eq.s32.totalorder %v999_v42, %v364_v18  ;;  %vm368_vm10 = vcmp.eq.s32.totalorder %v347_v4, %v364_v18  ;;  %vm369_vm11 = vcmp.eq.s32.totalorder %v348_v17, %v360_v16  ;;  %vm370_vm12 = vcmp.eq.s32.totalorder %v348_v17, %v364_v18  ;;  %v730_v26 = vpop.eup %729  ;;  %s476_s4 = scalar_lea.sflag [#allocation3], %s934_s26  ;;  %s769_s5 = scalar_lea.vmem %s1096_s19, 32 }
  0x48   : > { %v373_v21 = vsel %vm367_vm8, %v976_v12, 0.0  ;;  %v372_v23 = vsel %vm366_vm9, %v973_v10, 0.0  ;;  %v374_v24 = vsel %vm368_vm10, %v979_v14, 0.0  ;;  %v375_v25 = vsel %vm369_vm11, %v965_v5, 0.0  ;;  %v732_v28 = vpop.eup %731  ;;  %p770_p2 = scmp.ne.s32.totalorder %s1096_s19, %s769_s5  ;;  %s857_s15 = smov [#allocation2]  }
  0x49   : > { %v376_v27 = vsel %vm370_vm12, %v968_v7, 0.0  ;;  %v321_v29 = vadd.f32 %v730_v26, %v726_v19  ;;  %v377_v30 = vadd.f32 %v373_v21, %v371_v20  ;;  %v330_v32 = vadd.f32 %v732_v28, %v728_v22  ;;  %s773_s6 = sshll.u32 %s857_s15, 4  ;;  %s774_s6 = int_to_ptr.vmem [resolvable:$false] %s773_s6 }
  0x4a   : > { %v378_v33 = vsel %vm284_vm5, %v375_v25, 0.0  ;;  %v386_v9 = vadd.f32 %v374_v24, %v372_v23  ;;  %v387_v10 = vsel %vm284_vm5, %v376_v27, 0.0  ;;  %v440_v2 = vunpack.c.l.s4 %v856_v0  ;;  %v435_v24 = vld [vmem:[%s944_s29] sm:$0x3]  ;;  %p771_p3 = pnand %p770_p2, %p918_p4  ;;  %s775_s7 = scalar_lea.vmem %s774_s6, 64 }
  0x4b   : > { %v379_v36 = vadd.f32 %v378_v33, %v377_v30  ;;  %p776_p6 = scmp.lt.s32.totalorder %s1096_s19, %s774_s6  ;;  %p777_p7 = scmp.lt.s32.totalorder %s775_s7, %s769_s5 }
  0x4c   : > { %v388_v7 = vadd.f32 %v387_v10, %v386_v9  ;;  %v441_v4 = vunpack.c.0.s8 %v440_v2  ;;  %p772_p5 = pneg %p771_p3 }
  0x4d   : > { %v380_v41 = vrot.slane %v379_v36, 4  ;;  %p778_p9 = por %p777_p7, %p776_p6 }
  0x4e   : > { %v389_v44 = vrot.slane %v388_v7, 4  ;;  %v444_v20 = vsub.s32 %v441_v4, %v999_v42 }
  0x4f   : > { %v734_v31 = vpop.eup %733  ;;  %v381_v51 = vadd.f32 %v380_v41, %v379_v36  ;;  %p779_p10 = pnand %p778_p9, %p772_p5 }
  0x50   : > { %v736_v34 = vpop.eup %735  ;;  %v322_v12 = vsel %vm284_vm5, %v734_v31, 0.0  ;;  %v390_v53 = vadd.f32 %v389_v44, %v388_v7 }
  0x51   : > { %v323_v35 = vadd.f32 %v322_v12, %v321_v29  ;;  %v331_v14 = vsel %vm284_vm5, %v736_v34, 0.0  ;;  %v382_v57 = vrot.slane %v381_v51, 2 }
  0x52   : > { %v332_v5 = vadd.f32 %v331_v14, %v330_v32  ;;  %v391_v58 = vrot.slane %v390_v53, 2 }
  0x53   : > { %v324_v37 = vrot.slane %v323_v35, 4  ;;  %v383_v59 = vadd.f32 %v382_v57, %v381_v51 }
  0x54   : > { %v333_v38 = vrot.slane %v332_v5, 4  ;;  %v392_v61 = vadd.f32 %v391_v58, %v390_v53 }
  0x55   : > { %v325_v39 = vadd.f32 %v324_v37, %v323_v35  ;;  %v384_v62 = vrot.slane %v383_v59, 1 }
  0x56   : > { %v334_v40 = vadd.f32 %v333_v38, %v332_v5  ;;  %v393_v63 = vrot.slane %v392_v61, 1 }
  0x57   : > { %v326_v43 = vrot.slane %v325_v39, 2  ;;  %v385_v11 = vadd.f32 %v384_v62, %v383_v59 }
  0x58   : > { %v335_v45 = vrot.slane %v334_v40, 2  ;;  %v394_v15 = vadd.f32 %v393_v63, %v392_v61 }
  0x59   : > { %v327_v46 = vadd.f32 %v326_v43, %v325_v39 }
  0x5a   : > { %v336_v47 = vadd.f32 %v335_v45, %v334_v40 }
  0x5b   : > { %v328_v52 = vrot.slane %v327_v46, 1 }
  0x5c   : > { %v337_v54 = vrot.slane %v336_v47, 1 }
  0x5d   : > { %v329_v55 = vadd.f32 %v328_v52, %v327_v46 }
  0x5e   : > { %v338_v56 = vadd.f32 %v337_v54, %v336_v47 }
  0x5f   : > { %737 = vlog2.f32 %v329_v55 }
  0x60   : > { %739 = vlog2.f32 %v338_v56 }
  0x69   : > { %v738_v3 = vpop.eup %737 }
  0x6a   : > { %v740_v6 = vpop.eup %739  ;;  %v340_v8 = vmul.f32 0.6931472, %v738_v3 }
  0x6b   : > { %v342_v13 = vmul.f32 0.6931472, %v740_v6 }
  0x6c   : > { %v343_v16 = vadd.f32 %v340_v8, %v1006_v49 }
  0x6d   : > { %v344_v17 = vadd.f32 %v342_v13, %v1008_v50 }
  0x6e   : > { %v433_v18 = vsub.f32 %v343_v16, %v385_v11 }
  0x6f   : > { %v434_v19 = vsub.f32 %v344_v17, %v394_v15 }
  0x71   : > { %v438_v21 = vcombine.low %v433_v18, %v434_v19 }
  0x73   : > { %v445_v22 = vrot.slane %v438_v21, %v444_v20 }
  0x75   : > { %v447_v23 = vmul.f32 %v445_v22, %v1025_v60 }
  0x77   : > { %v455_v25 = vrot.slane %v447_v23, %v1004_v48 }
  0x79   : > { %v457_v26 = vadd.f32 %v455_v25, %v435_v24 }
  0x7b   : > { %462 = vst.msk [vmem:[%s944_s29] sm:$0x3] %vm939_vm0, %v457_v26 }
  0x7c   : > { %782 = shalt.err (!%p779_p10)
}
  0x7d   : > { %s783_s26 = scalar_lea.hbm %s1094_s28, 32  ;;  %s787_s30 = scalar_lea.hbm %s1147_s2, 64 }
  0x7e   : > { %p784_p11 = scmp.ne.s32.totalorder %s1094_s28, %s783_s26  ;;  %p788_p0 = scmp.lt.u32.totalorder %s1094_s28, %s1147_s2 }
  0x7f   : > { %p789_p1 = scmp.lt.u32.totalorder %s787_s30, %s783_s26  ;;  %p791_p3 = scmp.lt.u32.totalorder %s783_s26, %s1094_s28 }
  0x80   : > { %p785_p12 = pnand %p784_p11, %p918_p4 }
  0x81   : > { %p790_p2 = por %p789_p1, %p788_p0 }
  0x82   : > { %p786_p13 = pneg %p785_p12 }
  0x83   : > { %p792_p5 = por %p791_p3, %p790_p2 }
  0x85   : > { %p793_p6 = pnand %p792_p5, %p786_p13 }
  0x87   : > { %796 = shalt.err (!%p793_p6)
}
  0x88   : > { %662 = dma.vmem_to_hbm [thread:$0]  (%p918_p4), %s1096_s19, 32, %s1094_s28, %s476_s4  }
  0x89 PF: > { %p673_p7 = scmp.ge.s32.totalorder %s851_s17, 2  ;;  %s525_s10 = sand.u32 1, %s831_s12  }
  0x8a   : > { %s526_s11 = scalar_lea.sflag [#allocation3], %s525_s10 }
  0x8b   : > { %p667_p9 = pnand %p673_p7, %p925_p8 }
  0x8d   : > { %822 = dma.done.wait (!%p667_p9), %s526_s11, 32  }
  0x8e   : > { %824 = vsyncadd (!%p667_p9), %s526_s11, 4294967264  ;;  %s535_s21 = scalar_lea.sflag [#allocation5], %s525_s10 }
  0x8f   : > { %826 = dma.done.wait (!%p667_p9), %s535_s21, 32  }
  0x90   : > { %828 = vsyncadd (!%p667_p9), %s535_s21, 4294967264  ;;  %s20_s17 = sadd.s32 1, %s851_s17   ;;  %s1153_s12 = smov %s835_s13 }
  0x91   : > { %p17_p10 = scmp.ge.s32.totalorder %s20_s17, 4   ;;  %s1154_s13 = smov %s839_s14 }
  0x92   : > { %s1155_s14 = smov %s931_s25  ;;  %s1156_s15 = smov %s847_s16 }
  0x93   : > { %s1157_s16 = smov %s1159_s20  ;;  %19 = sbr.rel (!%p17_p10) target bundleno = 6 (0x6), region = 87 }
  0x9a   :  { %540 = vsyncpa [#allocation3], 1 }
  0x9b   :  { %542 = vsyncpa [#allocation3 + $0x1], 1 }
  0x9c   :  { %543 = vsyncpa [#allocation5], 1 }
  0x9d   :  { %545 = vsyncpa [#allocation5 + $0x1], 1 }

</bundles_post_ra>
